<compile_context>
chip_gen: v6e
topology: v6e:2x2x1
jax: 0.10.0
libtpu: 0.0.40
codegen_flags: <defaults>
</compile_context>

<pallas_src>
import jax
import jax.numpy as jnp
from jax import lax
from jax.experimental import pallas as pl
from jax.experimental.pallas import tpu as pltpu


def _group_conv_se_kernel(p_ref, w_ref, b_ref, w1_ref, w2_ref, o_ref):
    # p_ref : (K*K*Cin, H*W)   im2col patches (transposed), one image
    # w_ref : (Cout, K*K*Cin)  block-diagonal conv weight (transposed)
    # b_ref : (Cout, 1)        conv bias
    # w1_ref: (Cr_pad, Cout)   SE squeeze FC (PyTorch layout, zero-padded rows)
    # w2_ref: (Cout, Cr_pad)   SE excite  FC (PyTorch layout, zero-padded cols)
    # o_ref : (Cout, H*W)      lane-dense output tile
    # TODO(synk): cast the conv matmul operands to bf16 on v6e/v7x (bf16-native
    #             MXU) for 2x throughput; kept f32 here for bit-tight parity
    #             with the f32 reference.
    y = jnp.dot(w_ref[...], p_ref[...],
                preferred_element_type=jnp.float32) + b_ref[...]        # (Cout, HW)

    # --- Squeeze-and-Excitation, fused (all tiny, stays in VMEM/vregs) ---
    pooled = jnp.mean(y, axis=1, keepdims=True)                          # (Cout, 1)
    h = jnp.maximum(
        jnp.dot(w1_ref[...], pooled, preferred_element_type=jnp.float32), 0.0)
    s = jax.nn.sigmoid(
        jnp.dot(w2_ref[...], h, preferred_element_type=jnp.float32))     # (Cout, 1)

    o_ref[...] = (y * s).astype(o_ref.dtype)


def group_conv_se(x, conv_w, conv_b, fc1_w, fc2_w, *, num_group, kernel_size,
                  stride=1):
    """x: (N, Cin, H, W) NCHW.  conv_w: (Cout, Cin//G, K, K) (PyTorch OIHW).
    conv_b: (Cout,).  fc1_w: (Cout//r, Cout), fc2_w: (Cout, Cout//r)
    (PyTorch nn.Linear layout, y = x @ W.T)."""
    assert stride == 1  # TODO(synk): general stride support (module allows stride!=1)
    assert kernel_size % 2 == 1, "only odd ('same'-padding) kernel sizes supported"

    N, Cin, H, W = x.shape
    Cout = conv_w.shape[0]
    G, K = num_group, kernel_size
    assert Cin % G == 0 and Cout % G == 0
    cin_g, cout_g = Cin // G, Cout // G
    pad = K // 2
    HW = H * W
    KKC = K * K * Cin
    Cr = fc1_w.shape[0]

    # ---------- wrapper-side layout plumbing (plain JAX, done once) ----------
    # im2col, transposed: patches[n, (ky*K+kx)*Cin + c, y*W + x] = x_pad[n, c, y+ky, x+kx]
    x_pad = jnp.pad(x, ((0, 0), (0, 0), (pad, pad), (pad, pad)))
    cols = [x_pad[:, :, ky:ky + H, kx:kx + W].reshape(N, Cin, HW)
            for ky in range(K) for kx in range(K)]
    patches = jnp.stack(cols, axis=1).reshape(N, KKC, HW)

    # Block-diagonal dense conv weight, transposed: (Cout, K*K*Cin).
    w5 = conv_w.reshape(G, cout_g, cin_g, K, K)
    w_t = jnp.transpose(w5, (0, 1, 3, 4, 2))                  # (G, cout_g, K, K, cin_g)
    eye = jnp.eye(G, dtype=conv_w.dtype)
    w_bd = w_t[:, :, :, :, None, :] * eye[:, None, None, None, :, None]
    w_dense_t = w_bd.reshape(Cout, KKC)

    b_col = conv_b.reshape(Cout, 1)

    # SE weights: PyTorch nn.Linear layouts already match the transposed kernel
    # (h = W1 @ pooled, s = W2 @ h).  Pad the reduced dim up to a multiple of 8
    # sublanes; the zero rows/cols are inert (relu(0)=0, zero columns).
    Cr_pad = max(8, ((Cr + 7) // 8) * 8)
    w1p = jnp.zeros((Cr_pad, Cout), fc1_w.dtype).at[:Cr, :].set(fc1_w)
    w2p = jnp.zeros((Cout, Cr_pad), fc2_w.dtype).at[:, :Cr].set(fc2_w)

    # TODO(synk): for large H*W, tile the spatial axis (rows multiple of 8),
    #             accumulate the SE pool in VMEM scratch, and scale in a second
    #             pass so blocks fit v7x's 64 MiB VMEM.  Not needed at these sizes.
    out = pl.pallas_call(
        _group_conv_se_kernel,
        out_shape=jax.ShapeDtypeStruct((N, Cout, HW), jnp.float32),
        grid_spec=pltpu.PrefetchScalarGridSpec(
            num_scalar_prefetch=0,
            grid=(N,),
            in_specs=[
                pl.BlockSpec((None, KKC, HW), lambda n: (n, 0, 0)),
                pl.BlockSpec((Cout, KKC), lambda n: (0, 0)),
                pl.BlockSpec((Cout, 1), lambda n: (0, 0)),
                pl.BlockSpec((Cr_pad, Cout), lambda n: (0, 0)),
                pl.BlockSpec((Cout, Cr_pad), lambda n: (0, 0)),
            ],
            out_specs=pl.BlockSpec((None, Cout, HW), lambda n: (n, 0, 0)),
        ),
        compiler_params=pltpu.CompilerParams(
            dimension_semantics=("parallel",)),   # megacore split over images on v7x
    )(patches, w_dense_t, b_col, w1p, w2p)

    # (N, Cout, H*W) -> (N, Cout, H, W): pure reshape, no transpose needed.
    return out.reshape(N, Cout, H, W)


def _reference(x, conv_w, conv_b, fc1_w, fc2_w, num_group):
    k = conv_w.shape[2]
    y = lax.conv_general_dilated(
        x, conv_w, window_strides=(1, 1),
        padding=((k // 2, k // 2), (k // 2, k // 2)),
        dimension_numbers=('NCHW', 'OIHW', 'NCHW'),
        feature_group_count=num_group) + conv_b[None, :, None, None]
    pooled = jnp.mean(y, axis=(2, 3))
    h = jnp.maximum(pooled @ fc1_w.T, 0.0)
    s = jax.nn.sigmoid(h @ fc2_w.T)
    return y * s[:, :, None, None]


if __name__ == "__main__":
    N, Cin, Cout, K, G, H, W, red = 2, 32, 32, 3, 4, 16, 16, 16
    ks = jax.random.split(jax.random.PRNGKey(0), 5)
    x = jax.random.normal(ks[0], (N, Cin, H, W), jnp.float32)
    conv_w = jax.random.normal(ks[1], (Cout, Cin // G, K, K), jnp.float32) * 0.1
    conv_b = jax.random.normal(ks[2], (Cout,), jnp.float32) * 0.1
    fc1_w = jax.random.normal(ks[3], (Cout // red, Cout), jnp.float32) * 0.1
    fc2_w = jax.random.normal(ks[4], (Cout, Cout // red), jnp.float32) * 0.1

    out = group_conv_se(x, conv_w, conv_b, fc1_w, fc2_w,
                        num_group=G, kernel_size=K, stride=1)
    out = jax.block_until_ready(out)

    ref = _reference(x, conv_w, conv_b, fc1_w, fc2_w, G)
    assert out.shape == ref.shape == (N, Cout, H, W)
    err = float(jnp.max(jnp.abs(out - ref)))
    assert jnp.allclose(out, ref, rtol=2e-3, atol=2e-3), f"max abs err {err}"
    print("KERNEL_OK")
</pallas_src>

<mosaic_0001>
module attributes {stable_mosaic.version = 11 : i64} {
  func.func @_group_conv_se_kernel(%arg0: i32, %arg1: memref<1x288x256xf32, #tpu.memory_space<vmem>>, %arg2: memref<32x288xf32, #tpu.memory_space<vmem>>, %arg3: memref<32x1xf32, #tpu.memory_space<vmem>>, %arg4: memref<8x32xf32, #tpu.memory_space<vmem>>, %arg5: memref<32x8xf32, #tpu.memory_space<vmem>>, %arg6: memref<1x32x256xf32, #tpu.memory_space<vmem>>) attributes {dimension_semantics = [#tpu.dimension_semantics<parallel>], iteration_bounds = array<i64: 2>, scalar_prefetch = 0 : i64, scratch_operands = 0 : i64, tpu.core_type = #tpu.core_type<tc>, window_params = [{transform_indices = @transform_0, window_bounds = array<i64: 1, 288, 256>}, {pipeline_mode = #tpu.pipeline_mode<synchronous>, transform_indices = @transform_1, window_bounds = array<i64: 32, 288>}, {pipeline_mode = #tpu.pipeline_mode<synchronous>, transform_indices = @transform_2, window_bounds = array<i64: 32, 1>}, {pipeline_mode = #tpu.pipeline_mode<synchronous>, transform_indices = @transform_3, window_bounds = array<i64: 8, 32>}, {pipeline_mode = #tpu.pipeline_mode<synchronous>, transform_indices = @transform_4, window_bounds = array<i64: 32, 8>}, {transform_indices = @transform_5, window_bounds = array<i64: 1, 32, 256>}]} {
    %c0 = arith.constant 0 : index
    %c0_0 = arith.constant 0 : index
    %0 = vector.load %arg2[%c0, %c0_0] : memref<32x288xf32, #tpu.memory_space<vmem>>, vector<32x288xf32>
    %c0_1 = arith.constant 0 : index
    %c0_2 = arith.constant 0 : index
    %c0_3 = arith.constant 0 : index
    %1 = vector.load %arg1[%c0_1, %c0_2, %c0_3] : memref<1x288x256xf32, #tpu.memory_space<vmem>>, vector<1x288x256xf32>
    %2 = vector.shape_cast %1 : vector<1x288x256xf32> to vector<288x256xf32>
    %cst = arith.constant dense<0.000000e+00> : vector<32x256xf32>
    %3 = tpu.matmul %0, %2, %cst {dimension_numbers = #tpu.dot_dimension_numbers<[1], [0], [0], [1], [0, 0, 1, 1], [], []>} : vector<32x288xf32>, vector<288x256xf32>, vector<32x256xf32> -> vector<32x256xf32>
    %c0_4 = arith.constant 0 : index
    %c0_5 = arith.constant 0 : index
    %4 = vector.load %arg3[%c0_4, %c0_5] : memref<32x1xf32, #tpu.memory_space<vmem>>, vector<32x1xf32>
    %5 = vector.broadcast %4 : vector<32x1xf32> to vector<32x256xf32>
    %6 = arith.addf %3, %5 : vector<32x256xf32>
    %cst_6 = arith.constant dense<0.000000e+00> : vector<32xf32>
    %7 = vector.multi_reduction <add>, %6, %cst_6 [1] : vector<32x256xf32> to vector<32xf32>
    %8 = vector.shape_cast %7 : vector<32xf32> to vector<32x1xf32>
    %cst_7 = arith.constant 2.560000e+02 : f32
    %9 = vector.broadcast %cst_7 : f32 to vector<32x1xf32>
    %10 = arith.divf %8, %9 : vector<32x1xf32>
    %c0_8 = arith.constant 0 : index
    %c0_9 = arith.constant 0 : index
    %11 = vector.load %arg4[%c0_8, %c0_9] : memref<8x32xf32, #tpu.memory_space<vmem>>, vector<8x32xf32>
    %cst_10 = arith.constant dense<0.000000e+00> : vector<8x1xf32>
    %12 = tpu.matmul %11, %10, %cst_10 {dimension_numbers = #tpu.dot_dimension_numbers<[1], [0], [0], [1], [0, 0, 1, 1], [], []>} : vector<8x32xf32>, vector<32x1xf32>, vector<8x1xf32> -> vector<8x1xf32>
    %cst_11 = arith.constant 0.000000e+00 : f32
    %13 = vector.broadcast %cst_11 : f32 to vector<8x1xf32>
    %14 = arith.maximumf %12, %13 : vector<8x1xf32>
    %c0_12 = arith.constant 0 : index
    %c0_13 = arith.constant 0 : index
    %15 = vector.load %arg5[%c0_12, %c0_13] : memref<32x8xf32, #tpu.memory_space<vmem>>, vector<32x8xf32>
    %cst_14 = arith.constant dense<0.000000e+00> : vector<32x1xf32>
    %16 = tpu.matmul %15, %14, %cst_14 {dimension_numbers = #tpu.dot_dimension_numbers<[1], [0], [0], [1], [0, 0, 1, 1], [], []>} : vector<32x8xf32>, vector<8x1xf32>, vector<32x1xf32> -> vector<32x1xf32>
    %17 = arith.negf %16 : vector<32x1xf32>
    %18 = math.exp %17 : vector<32x1xf32>
    %cst_15 = arith.constant 1.000000e+00 : f32
    %19 = vector.broadcast %cst_15 : f32 to vector<32x1xf32>
    %20 = arith.addf %19, %18 : vector<32x1xf32>
    %21 = arith.divf %19, %20 : vector<32x1xf32>
    %22 = vector.broadcast %21 : vector<32x1xf32> to vector<32x256xf32>
    %23 = arith.mulf %6, %22 : vector<32x256xf32>
    %c0_16 = arith.constant 0 : index
    %c0_17 = arith.constant 0 : index
    %c0_18 = arith.constant 0 : index
    %24 = vector.load %arg6[%c0_16, %c0_17, %c0_18] : memref<1x32x256xf32, #tpu.memory_space<vmem>>, vector<1x32x256xf32>
    %25 = vector.shape_cast %24 : vector<1x32x256xf32> to vector<32x256xf32>
    %26 = vector.shape_cast %23 : vector<32x256xf32> to vector<1x32x256xf32>
    tpu.vector_store %arg6[%c0_16, %c0_17, %c0_18], %26 {strides = array<i32>} : memref<1x32x256xf32, #tpu.memory_space<vmem>>, vector<1x32x256xf32>,
    return
  }
  func.func @transform_0(%arg0: i32) -> (i32, i32, i32) {
    %c0_i32 = arith.constant 0 : i32
    %c0_i32_0 = arith.constant 0 : i32
    %c0_i32_1 = arith.constant 0 : i32
    return %arg0, %c0_i32, %c0_i32_0 : i32, i32, i32
  }
  func.func @transform_1(%arg0: i32) -> (i32, i32) {
    %c0_i32 = arith.constant 0 : i32
    %c0_i32_0 = arith.constant 0 : i32
    %c0_i32_1 = arith.constant 0 : i32
    return %c0_i32, %c0_i32_0 : i32, i32
  }
  func.func @transform_2(%arg0: i32) -> (i32, i32) {
    %c0_i32 = arith.constant 0 : i32
    %c0_i32_0 = arith.constant 0 : i32
    %c0_i32_1 = arith.constant 0 : i32
    return %c0_i32, %c0_i32_0 : i32, i32
  }
  func.func @transform_3(%arg0: i32) -> (i32, i32) {
    %c0_i32 = arith.constant 0 : i32
    %c0_i32_0 = arith.constant 0 : i32
    %c0_i32_1 = arith.constant 0 : i32
    return %c0_i32, %c0_i32_0 : i32, i32
  }
  func.func @transform_4(%arg0: i32) -> (i32, i32) {
    %c0_i32 = arith.constant 0 : i32
    %c0_i32_0 = arith.constant 0 : i32
    %c0_i32_1 = arith.constant 0 : i32
    return %c0_i32, %c0_i32_0 : i32, i32
  }
  func.func @transform_5(%arg0: i32) -> (i32, i32, i32) {
    %c0_i32 = arith.constant 0 : i32
    %c0_i32_0 = arith.constant 0 : i32
    %c0_i32_1 = arith.constant 0 : i32
    return %arg0, %c0_i32, %c0_i32_0 : i32, i32, i32
  }
}

</mosaic_0001>

<bundles_post_ra>
// kernel: tpu_custom_call.1
= control target key start
LH: loop header
LB: loop body
LE: loop exit
PB: predicated region body
PF: predicated region fallthrough
CT: control target
= control target key end

     0   :  { %10 = vsyncpa [#allocation3], 0  ;;  %s1542_s0 = inlined_call_operand.hbm [shape: f32[2,288,256], index: 0, kind: input, shape index: {}]   ;;  %s1543_s1 = inlined_call_operand.hbm [shape: f32[32,288], index: 1, kind: input, shape index: {}]   ;;  %s1544_s2 = inlined_call_operand.vmem [shape: f32[32,1], index: 2, kind: input, shape index: {}]   ;;  %s1545_s3 = inlined_call_operand.vmem [shape: f32[8,32], index: 3, kind: input, shape index: {}]   ;;  %s1546_s4 = inlined_call_operand.vmem [shape: f32[32,8], index: 4, kind: input, shape index: {}]   ;;  %s1547_s5 = inlined_call_operand.hbm [shape: f32[2,32,256], index: 5, kind: output, shape index: {}]  }
   0x1   :  { %12 = vsyncpa [#allocation3 + $0x1], 0 }
   0x2   :  { %13 = vsyncpa [#allocation6], 0 }
   0x3   :  { %14 = vsyncpa [#allocation4], 0 }
   0x4   :  { %16 = vsyncpa [#allocation4 + $0x1], 0  ;;  %s1217_s18 = smov 0   ;;  %s1219_s19 = smov 0  }
   0x5   :  { %s1221_s20 = smov 0   ;;  %s1223_s21 = smov 0  }
   0x6 LB: > { %s1238_s22 = sadd.s32 4294967295, %s1173_s21   ;;  %s908_s23 = sadd.s32 4294967294, %s1173_s21   ;;  %s1173_s21 = sphi %s1223_s21, %s1569_s21   ;;  %s1169_s20 = sphi %s1221_s20, %s1568_s20   ;;  %s1165_s19 = sphi %s1219_s19, %s1567_s19   ;;  %s1161_s18 = sphi %s1217_s18, %s1566_s18  }
   0x7   : > { %p42_p0 = scmp.ne.s32.totalorder %s1165_s19, %s1161_s18  ;;  %p1548_p1 = scmp.eq.s32.totalorder %s1238_s22, 0 }
   0x8   : > { %p156_p3 = scmp.eq.s32.totalorder %s908_s23, 1  ;;  %p909_p5 = scmp.ge.s32.totalorder %s1173_s21, 1 }
   0x9   : > { %p1247_p4 = por %p1548_p1, %p42_p0  ;;  %p163_p7 = scmp.lt.s32.totalorder %s1173_s21, 3 }
   0xa   : > { %p1252_p6 = por %p156_p3, %p42_p0  ;;  %s1175_s27 = smov [#allocation5]  }
   0xb   : > { %s1552_s24 = scalar_select %p1247_p4, 1, 0 }
   0xc   : > { %s1553_s25 = scalar_select %p1252_p6, 1, 0 }
   0xd   : > { %p1257_p8 = pnand %p909_p5, %p163_p7  ;;  %s175_s28 = sshll.u32 %s1175_s27, 4  ;;  %s176_s28 = int_to_ptr.vmem [resolvable:$true] %s175_s28 }
   0xe   : > { %s1271_s30 = sadd.s32 1, %s1173_s21   ;;  %s29_s6 = sadd.s32 1, %s1169_s20 }
   0xf   : > { %s1554_s26 = scalar_select %p1257_p8, 1, 0 }
  0x10   : > { %p975_p9 = pneg %p1257_p8  ;;  %s26_s7 = ssub.s32 %s1173_s21, %s1271_s30 }
  0x11   : > { %s1062_s8 = scalar_lea.vmem %s176_s28, 1536  ;;  %p1070_p5 = scmp.lt.s32.totalorder %s176_s28, %s176_s28 }
  0x12   : > { %p1266_p11 = pnand %p975_p9, %p1548_p1  ;;  %p1063_p13 = scmp.ne.s32.totalorder %s176_s28, %s1062_s8 }
  0x13   : > { %p1071_p7 = scmp.lt.s32.totalorder %s1062_s8, %s1062_s8 }
  0x14   : > { %p1053_p12 = pneg %p1266_p11 }
  0x15   : > { %p1072_p10 = por %p1071_p7, %p1070_p5 }
  0x16   : > { %p1065_p0 = pnand %p1063_p13, %p1053_p12 }
  0x18   : > { %p1066_p3 = pneg %p1065_p0 }
  0x1a   : > { %p1073_p2 = pnand %p1072_p10, %p1066_p3 }
  0x1c   : > { %1076 = shalt.err (!%p1073_p2)
}
  0x1d   : > { %s1176_s9 = smov 384   ;;  %s1177_s10 = smov 24  }
  0x1e   : > { %978 = dma.hbm_to_vmem [thread:$0]  (!%p1266_p11), %s1543_s1, 1536, %s176_s28, [#allocation6], %s1176_s9, %s1176_s9, %s1177_s10  }
  0x1f   : > { %p27_p9 = scmp.eq.s32.totalorder %s26_s7, 0  ;;  %p36_p12 = scmp.ne.s32.totalorder %s1169_s20, %s1165_s19 }
  0x20   : > { %p37_p10 = scmp.eq.s32.totalorder %s1173_s21, 0  ;;  %p988_p2 = scmp.lt.s32.totalorder %s1173_s21, 2 }
  0x21   : > { %s1288_s13 = scalar_select %p27_p9, %s1169_s20, %s29_s6  }
  0x22   : > { %p38_p13 = por %p37_p10, %p36_p12  ;;  %p1556_p0 = scmp.eq.s32.totalorder %s1238_s22, 1 }
  0x23   : > { %s198_s15 = sand.u32 1, %s1169_s20   ;;  %s965_s16 = smul.u32 9216, %s1173_s21 }
  0x24   : > { %p1292_p3 = por %p1556_p0, %p36_p12  ;;  %s964_s17 = smul.u32 576, %s198_s15 }
  0x25   : > { %s1301_s29 = scalar_lea.hbm %s1542_s0, %s965_s16  ;;  %p1303_p11 = pnand %p988_p2, %p38_p13 }
  0x26   : > { %s1557_s14 = scalar_select %p1292_p3, 1, 0 }
  0x27   : > { %s202_s6 = scalar_lea.vmem [#allocation2], %s964_s17  ;;  %s1309_s8 = scalar_lea.sflag [#allocation3], %s198_s15 }
  0x28   : > { %s209_s7 = sshll.u32 %s202_s6, 4  ;;  %s1077_s9 = scalar_lea.hbm %s1301_s29, 9216  ;;  %s1307_s7 = int_to_ptr.vmem [resolvable:$true] %s209_s7 }
  0x29   : > { %p1078_p5 = scmp.ne.s32.totalorder %s1301_s29, %s1077_s9  ;;  %p1079_p7 = pneg %p1303_p11 }
  0x2a   : > { %s1082_s12 = scalar_lea.hbm %s1542_s0, 18432  ;;  %p1083_p10 = scmp.lt.s32.totalorder %s1301_s29, %s1542_s0 }
  0x2b   : > { %p1080_p9 = pnand %p1079_p7, %p1078_p5  ;;  %p1084_p2 = scmp.lt.s32.totalorder %s1082_s12, %s1077_s9 }
  0x2d   : > { %p1081_p12 = pneg %p1080_p9  ;;  %p1085_p13 = por %p1084_p2, %p1083_p10 }
  0x2f   : > { %p1086_p0 = pnand %p1085_p13, %p1081_p12 }
  0x31   : > { %1089 = shalt.err (!%p1086_p0)
}
  0x32   : > { %s1090_s15 = scalar_lea.vmem %s1307_s7, 9216  ;;  %s1178_s17 = smov [#allocation2]  }
  0x33   : > { %p1091_p1 = scmp.ne.s32.totalorder %s1307_s7, %s1090_s15  ;;  %s1095_s27 = sshll.u32 %s1178_s17, 4  ;;  %s1096_s27 = int_to_ptr.vmem [resolvable:$false] %s1095_s27 }
  0x34   : > { %s1097_s6 = scalar_lea.vmem %s1096_s27, 18432  ;;  %p1098_p9 = scmp.lt.s32.totalorder %s1307_s7, %s1096_s27 }
  0x35   : > { %p1093_p6 = pnand %p1091_p1, %p1079_p7  ;;  %p1099_p3 = scmp.lt.s32.totalorder %s1097_s6, %s1090_s15 }
  0x37   : > { %p1094_p5 = pneg %p1093_p6  ;;  %p1100_p4 = por %p1099_p3, %p1098_p9 }
  0x39   : > { %p1101_p8 = pnand %p1100_p4, %p1094_p5 }
  0x3b   : > { %1104 = shalt.err (!%p1101_p8)
}
  0x3c   : > { %s1179_s9 = smov 256   ;;  %s1180_s10 = smov 16  }
  0x3d   : > { %982 = dma.hbm_to_vmem [thread:$0]  (!%p1303_p11), %s1301_s29, 9216, %s1307_s7, %s1309_s8, %s1179_s9, %s1179_s9, %s1180_s10  }
  0x3e   : > { %p1559_p1 = scmp.ne.s32.totalorder %s1554_s26, 0 }
  0x3f   : > { %s1333_s11 = sand.u32 (!%p1559_p1), 1, %s1165_s19   ;;  %p1560_p4 = scmp.ne.s32.totalorder (!%p1559_p1), %s1552_s24, 0 }
  0x40   : > { %221 = sbr.rel (%p1559_p1) target bundleno = 1073 (0x431), region = 40  ;;  %s224_s16 = scalar_lea.sflag (!%p1559_p1), [#allocation3], %s1333_s11 }
  0x41   : > { %s966_s12 = smul.u32 (!%p1559_p1), 576, %s1333_s11 }
  0x43   : > { %s1337_s23 = scalar_lea.vmem (!%p1559_p1), [#allocation2], %s966_s12 }
  0x45   : > { %1148 = dma.done.wait (%p1560_p4), %s224_s16, 9216  }
  0x46   : > { %1150 = vsyncadd (%p1560_p4), %s224_s16, 4294958080  ;;  %p1561_p6 = scmp.eq.s32.totalorder %s1238_s22, 0 }
  0x48   : > { %1152 = dma.done.wait (%p1561_p6), [#allocation6], 1536   ;;  %p1562_p8 = pmov %p1561_p6 }
  0x49   : > { %v1181_v0 = vmov 0.0   ;;  %v1182_v1 = vmov 0   ;;  %v301_v2 = vld [vmem:[%s1337_s23 + $0xf8] sm:$0xff]  ;;  %v300_v3 = vld [vmem:[%s1337_s23 + $0xf0] sm:$0xff]  ;;  %v299_v4 = vld [vmem:[%s1337_s23 + $0xe8] sm:$0xff]  ;;  %vm366_vm0 = vcmask 261120  }
  0x4a   : > { %1154 = vsyncadd (%p1562_p8), [#allocation6], 4294965760  ;;  %532 = vmatprep.mubr.f32.mxu1 %v1181_v0  ;;  %1034 = vset.pattern.permute.xlu1 %v1182_v1  ;;  %v298_v5 = vld [vmem:[%s1337_s23 + $0xe0] sm:$0xff]  ;;  %v297_v6 = vld [vmem:[%s1337_s23 + $0xd8] sm:$0xff]  ;;  %vm1183_vm1 = vmmov 0   ;;  %vm653_vm2 = vcmask 64512  }
  0x4b   : > { %1033 = vset.pattern.permute.xlu0 %v1182_v1  ;;  %379 = vmatprep.subr.mxu0 %v301_v2  ;;  %v296_v7 = vld [vmem:[%s1337_s23 + $0xd0] sm:$0xff]  ;;  %v295_v8 = vld [vmem:[%s1337_s23 + $0xc8] sm:$0xff]  ;;  %v294_v9 = vld [vmem:[%s1337_s23 + $0xc0] sm:$0xff]  ;;  %s915_s28 = sshll.u32 %s1333_s11, 6  ;;  %s934_s15 = sshll.u32 %s1238_s22, 10 }
  0x4c   : > { %380 = vmatpush1.msra.mxu0 %v300_v3  ;;  %v293_v10 = vld [vmem:[%s1337_s23 + $0xb8] sm:$0xff]  ;;  %v292_v11 = vld [vmem:[%s1337_s23 + $0xb0] sm:$0xff]  ;;  %v291_v12 = vld [vmem:[%s1337_s23 + $0xa8] sm:$0xff]  ;;  %s257_s7 = scalar_lea.vmem [#allocation7], %s915_s28  ;;  %s1497_s6 = scalar_lea.hbm %s1547_s5, %s934_s15 }
  0x4d   : > { %381 = vmatprep.subr.mxu0 %v299_v4  ;;  %v290_v13 = vld [vmem:[%s1337_s23 + $0xa0] sm:$0xff]  ;;  %v289_v14 = vld [vmem:[%s1337_s23 + $0x98] sm:$0xff]  ;;  %v288_v15 = vld [vmem:[%s1337_s23 + $0x90] sm:$0xff]  ;;  %s825_s8 = sshll.u32 %s257_s7, 4  ;;  %s812_s22 = scalar_lea.sflag [#allocation4], %s1333_s11  ;;  %s1492_s8 = int_to_ptr.vmem [resolvable:$true] %s825_s8 }
  0x4e   : > { %382 = vmatpush1.msra.mxu0 %v298_v5  ;;  %v287_v16 = vld [vmem:[%s1337_s23 + $0x88] sm:$0xff]  ;;  %v286_v17 = vld [vmem:[%s1337_s23 + $0x80] sm:$0xff]  ;;  %v285_v18 = vld [vmem:[%s1337_s23 + $0x78] sm:$0xff]  ;;  %s1105_s9 = scalar_lea.vmem %s1492_s8, 1024  ;;  %p1563_p11 = scmp.ne.s32.totalorder %s1557_s14, 0 }
  0x4f   : > { %383 = vmatprep.subr.mxu0 %v297_v6  ;;  %v284_v19 = vld [vmem:[%s1337_s23 + $0x70] sm:$0xff]  ;;  %v283_v20 = vld [vmem:[%s1337_s23 + $0x68] sm:$0xff]  ;;  %v282_v21 = vld [vmem:[%s1337_s23 + $0x60] sm:$0xff]  ;;  %p1106_p3 = scmp.ne.s32.totalorder %s1492_s8, %s1105_s9  ;;  %s1184_s10 = smov [#allocation7]  }
  0x50   : > { %384 = vmatpush1.msra.mxu0 %v296_v7  ;;  %v281_v22 = vld [vmem:[%s1337_s23 + $0x58] sm:$0xff]  ;;  %v280_v23 = vld [vmem:[%s1337_s23 + $0x50] sm:$0xff]  ;;  %v279_v26 = vld [vmem:[%s1337_s23 + $0x48] sm:$0xff]  ;;  %s1109_s12 = sshll.u32 %s1184_s10, 4  ;;  %s1110_s12 = int_to_ptr.vmem [resolvable:$false] %s1109_s12 }
  0x51   : > { %385 = vmatprep.subr.mxu0 %v295_v8  ;;  %v341_v24 = vld [vmem:[%s1337_s23 + $0x238] sm:$0xff]  ;;  %v340_v25 = vld [vmem:[%s1337_s23 + $0x230] sm:$0xff]  ;;  %v339_v27 = vld [vmem:[%s1337_s23 + $0x228] sm:$0xff]  ;;  %p1107_p7 = pnand %p1106_p3, %p1563_p11  ;;  %s1111_s16 = scalar_lea.vmem %s1110_s12, 2048 }
  0x52   : > { %386 = vmatpush1.msra.mxu0 %v294_v9  ;;  %492 = vmatprep.subr.mxu1 %v341_v24  ;;  %v278_v28 = vld [vmem:[%s1337_s23 + $0x40] sm:$0xff]  ;;  %v337_v30 = vld [vmem:[%s1337_s23 + $0x218] sm:$0xff]  ;;  %v336_v32 = vld [vmem:[%s1337_s23 + $0x210] sm:$0xff]  ;;  %p1112_p10 = scmp.lt.s32.totalorder %s1492_s8, %s1110_s12  ;;  %p1113_p2 = scmp.lt.s32.totalorder %s1111_s16, %s1105_s9 }
  0x53   : > { %387 = vmatprep.subr.mxu0 %v293_v10  ;;  %493 = vmatpush1.msra.mxu1 %v340_v25  ;;  %v338_v29 = vld [vmem:[%s1337_s23 + $0x220] sm:$0xff]  ;;  %v277_v31 = vld [vmem:[%s1337_s23 + $0x38] sm:$0xff]  ;;  %v276_v33 = vld [vmem:[%s1337_s23 + $0x30] sm:$0xff]  ;;  %p1108_p12 = pneg %p1107_p7 }
  0x54   : > { %388 = vmatpush1.msra.mxu0 %v292_v11  ;;  %494 = vmatprep.subr.mxu1 %v339_v27  ;;  %v335_v34 = vld [vmem:[%s1337_s23 + $0x208] sm:$0xff]  ;;  %v274_v37 = vld [vmem:[%s1337_s23 + $0x20] sm:$0xff]  ;;  %v273_v39 = vld [vmem:[%s1337_s23 + $0x18] sm:$0xff]  ;;  %p1114_p13 = por %p1113_p2, %p1112_p10 }
  0x55   : > { %389 = vmatprep.subr.mxu0 %v291_v12  ;;  %495 = vmatpush1.msra.mxu1 %v338_v29  ;;  %v275_v35 = vld [vmem:[%s1337_s23 + $0x28] sm:$0xff]  ;;  %v334_v38 = vld [vmem:[%s1337_s23 + $0x200] sm:$0xff]  ;;  %v260_v40 = vld [vmem:[#allocation5 + $0x10] sm:$0xff] }
  0x56   : > { %390 = vmatpush1.msra.mxu0 %v290_v13  ;;  %496 = vmatprep.subr.mxu1 %v337_v30  ;;  %v259_v36 = vld [vmem:[#allocation5 + $0x8] sm:$0xff]  ;;  %v272_v41 = vld [vmem:[%s1337_s23 + $0x10] sm:$0xff]  ;;  %v270_v44 = vld [vmem:[%s1337_s23] sm:$0xff]  ;;  %p1115_p0 = pnand %p1114_p13, %p1108_p12 }
  0x57   : > { %391 = vmatprep.subr.mxu0 %v289_v14  ;;  %497 = vmatpush1.msra.mxu1 %v336_v32  ;;  %v271_v42 = vld [vmem:[%s1337_s23 + $0x8] sm:$0xff]  ;;  %v345_v45 = vld [vmem:[%s1544_s2 + $0x18] sm:$0xff]  ;;  %v332_v48 = vld [vmem:[%s1337_s23 + $0x1f0] sm:$0xff] }
  0x58   : > { %392 = vmatpush1.msra.mxu0 %v288_v15  ;;  %498 = vmatprep.subr.mxu1 %v335_v34  ;;  %v343_v43 = vld [vmem:[%s1544_s2 + $0x8] sm:$0xff]  ;;  %v333_v46 = vld [vmem:[%s1337_s23 + $0x1f8] sm:$0xff]  ;;  %v342_v50 = vld [vmem:[%s1544_s2] sm:$0xff] }
  0x59   : > { %393 = vmatprep.subr.mxu0 %v287_v16  ;;  %443 = vmatprep.mubr.f32.mxu0 %v259_v36  ;;  %v263_v47 = vld [vmem:[#allocation5 + $0x28] sm:$0xff]  ;;  %v330_v51 = vld [vmem:[%s1337_s23 + $0x1e0] sm:$0xff]  ;;  %v344_v52 = vld [vmem:[%s1544_s2 + $0x10] sm:$0xff] }
  0x5a   : > { %394 = vmatpush1.msra.mxu0 %v286_v17  ;;  %499 = vmatpush1.msra.mxu1 %v334_v38  ;;  %v331_v49 = vld [vmem:[%s1337_s23 + $0x1e8] sm:$0xff]  ;;  %v329_v53 = vld [vmem:[%s1337_s23 + $0x1d8] sm:$0xff]  ;;  %v266_v54 = vld [vmem:[#allocation5 + $0x40] sm:$0xff] }
  0x5b   : > { %395 = vmatprep.subr.mxu0 %v285_v18  ;;  %916 = vmatmul.mubr.msk.f32.vlgmr.msra.gmra.mxu1 %vm366_vm0, %v260_v40  ;;  %v328_v55 = vld [vmem:[%s1337_s23 + $0x1d0] sm:$0xff]  ;;  %v327_v56 = vld [vmem:[%s1337_s23 + $0x1c8] sm:$0xff]  ;;  %v326_v57 = vld [vmem:[%s1337_s23 + $0x1c0] sm:$0xff] }
  0x5c   : > { %396 = vmatpush1.msra.mxu0 %v284_v19  ;;  %538 = vmatprep.mubr.f32.mxu1 %v1181_v0  ;;  %v325_v58 = vld [vmem:[%s1337_s23 + $0x1b8] sm:$0xff]  ;;  %v324_v60 = vld [vmem:[%s1337_s23 + $0x1b0] sm:$0xff]  ;;  %v323_v61 = vld [vmem:[%s1337_s23 + $0x1a8] sm:$0xff] }
  0x5d   : > { %397 = vmatprep.subr.mxu0 %v283_v20  ;;  %353 = vperm.xlu1 %1034, %v343_v43   ;;  %v269_v59 = vld [vmem:[#allocation5 + $0x58] sm:$0xff]  ;;  %v322_v62 = vld [vmem:[%s1337_s23 + $0x1a0] sm:$0xff]  ;;  %v320_v1 = vld [vmem:[%s1337_s23 + $0x190] sm:$0xff] }
  0x5e   : > { %398 = vmatpush1.msra.mxu0 %v282_v21  ;;  %363 = vperm.xlu0 %1033, %v345_v45   ;;  %v321_v63 = vld [vmem:[%s1337_s23 + $0x198] sm:$0xff]  ;;  %v319_v2 = vld [vmem:[%s1337_s23 + $0x188] sm:$0xff]  ;;  %v318_v3 = vld [vmem:[%s1337_s23 + $0x180] sm:$0xff] }
  0x5f   : > { %399 = vmatprep.subr.mxu0 %v281_v22  ;;  %917 = vmatmul.mubr.msk.f32.gmra.mxu1 %vm366_vm0, %v263_v47  ;;  %v317_v4 = vld [vmem:[%s1337_s23 + $0x178] sm:$0xff]  ;;  %v316_v5 = vld [vmem:[%s1337_s23 + $0x170] sm:$0xff]  ;;  %v315_v6 = vld [vmem:[%s1337_s23 + $0x168] sm:$0xff] }
  0x60   : > { %400 = vmatpush1.msra.mxu0 %v280_v23  ;;  %544 = vmatprep.mubr.f32.mxu1 %v1181_v0  ;;  %v314_v7 = vld [vmem:[%s1337_s23 + $0x160] sm:$0xff]  ;;  %v313_v8 = vld [vmem:[%s1337_s23 + $0x158] sm:$0xff]  ;;  %v312_v9 = vld [vmem:[%s1337_s23 + $0x150] sm:$0xff] }
  0x61   : > { %401 = vmatprep.subr.mxu0 %v279_v26  ;;  %348 = vperm.xlu1 %1034, %v342_v50   ;;  %v311_v10 = vld [vmem:[%s1337_s23 + $0x148] sm:$0xff]  ;;  %v310_v11 = vld [vmem:[%s1337_s23 + $0x140] sm:$0xff]  ;;  %v309_v12 = vld [vmem:[%s1337_s23 + $0x138] sm:$0xff] }
  0x62   : > { %402 = vmatpush1.msra.mxu0 %v278_v28  ;;  %358 = vperm.xlu0 %1033, %v344_v52   ;;  %v308_v13 = vld [vmem:[%s1337_s23 + $0x130] sm:$0xff]  ;;  %v307_v14 = vld [vmem:[%s1337_s23 + $0x128] sm:$0xff]  ;;  %v306_v15 = vld [vmem:[%s1337_s23 + $0x120] sm:$0xff] }
  0x63   : > { %403 = vmatprep.subr.mxu0 %v277_v31  ;;  %918 = vmatmul.mubr.msk.f32.gmra.mxu1 %vm366_vm0, %v266_v54  ;;  %v305_v16 = vld [vmem:[%s1337_s23 + $0x118] sm:$0xff]  ;;  %v304_v17 = vld [vmem:[%s1337_s23 + $0x110] sm:$0xff]  ;;  %v303_v18 = vld [vmem:[%s1337_s23 + $0x108] sm:$0xff] }
  0x64   : > { %404 = vmatpush1.msra.mxu0 %v276_v33  ;;  %550 = vmatprep.mubr.f32.mxu1 %v1181_v0  ;;  %v302_v19 = vld [vmem:[%s1337_s23 + $0x100] sm:$0xff]  ;;  %v261_v22 = vld [vmem:[#allocation5 + $0x18] sm:$0xff]  ;;  %v264_v24 = vld [vmem:[#allocation5 + $0x30] sm:$0xff] }
  0x65   : > { %405 = vmatprep.subr.mxu0 %v275_v35  ;;  %945 = vmatprep.subr.mxu1 %v1181_v0  ;;  %v258_v20 = vld [vmem:[#allocation5] sm:$0xff]  ;;  %v265_v23 = vld [vmem:[#allocation5 + $0x38] sm:$0xff]  ;;  %v268_v25 = vld [vmem:[#allocation5 + $0x50] sm:$0xff] }
  0x66   : > { %406 = vmatpush1.msra.mxu0 %v274_v37  ;;  %v262_v21 = vld [vmem:[#allocation5 + $0x20] sm:$0xff]  ;;  %v267_v26 = vld [vmem:[#allocation5 + $0x48] sm:$0xff] }
  0x67   : > { %407 = vmatprep.subr.mxu0 %v273_v39  ;;  %919 = vmatmul.mubr.msk.f32.gmra.mxu1 %vm366_vm0, %v269_v59 }
  0x68   : > { %408 = vmatpush1.msra.mxu0 %v272_v41  ;;  %953 = vmatprep.mubr.msk.f32.mxu1 %vm1183_vm1, %v1181_v0 }
  0x69   : > { %409 = vmatprep.subr.mxu0 %v271_v42 }
  0x6a   : > { %410 = vmatpush1.msra.mxu0 %v270_v44 }
  0x6b   : > { %411 = vmatprep.subr.mxu0 %v333_v46 }
  0x6c   : > { %412 = vmatpush2.msra.mxu0 %v332_v48 }
  0x6d   : > { %413 = vmatprep.subr.mxu0 %v331_v49 }
  0x6e   : > { %414 = vmatpush2.msra.mxu0 %v330_v51 }
  0x6f   : > { %415 = vmatprep.subr.mxu0 %v329_v53 }
  0x70   : > { %416 = vmatpush2.msra.mxu0 %v328_v55 }
  0x71   : > { %417 = vmatprep.subr.mxu0 %v327_v56 }
  0x72   : > { %418 = vmatpush2.msra.mxu0 %v326_v57 }
  0x73   : > { %419 = vmatprep.subr.mxu0 %v325_v58 }
  0x74   : > { %420 = vmatpush2.msra.mxu0 %v324_v60 }
  0x75   : > { %421 = vmatprep.subr.mxu0 %v323_v61 }
  0x76   : > { %422 = vmatpush2.msra.mxu0 %v322_v62 }
  0x77   : > { %423 = vmatprep.subr.mxu0 %v321_v63 }
  0x78   : > { %424 = vmatpush2.msra.mxu0 %v320_v1 }
  0x79   : > { %425 = vmatprep.subr.mxu0 %v319_v2 }
  0x7a   : > { %426 = vmatpush2.msra.mxu0 %v318_v3 }
  0x7b   : > { %427 = vmatprep.subr.mxu0 %v317_v4 }
  0x7c   : > { %428 = vmatpush2.msra.mxu0 %v316_v5 }
  0x7d   : > { %429 = vmatprep.subr.mxu0 %v315_v6 }
  0x7e   : > { %430 = vmatpush2.msra.mxu0 %v314_v7 }
  0x7f   : > { %431 = vmatprep.subr.mxu0 %v313_v8 }
  0x80   : > { %432 = vmatpush2.msra.mxu0 %v312_v9 }
  0x81   : > { %433 = vmatprep.subr.mxu0 %v311_v10 }
  0x82   : > { %434 = vmatpush2.msra.mxu0 %v310_v11 }
  0x83   : > { %435 = vmatprep.subr.mxu0 %v309_v12  ;;  %v574_v12 = vld [vmem:[%s1545_s3] sm:$0xff] }
  0x84   : > { %436 = vmatpush2.msra.mxu0 %v308_v13  ;;  %v649_v13 = vld [vmem:[%s1546_s4] sm:$0xff] }
  0x85   : > { %437 = vmatprep.subr.mxu0 %v307_v14 }
  0x86   : > { %438 = vmatpush2.msra.mxu0 %v306_v15 }
  0x87   : > { %439 = vmatprep.subr.mxu0 %v305_v16 }
  0x88   : > { %440 = vmatpush2.msra.mxu0 %v304_v17  ;;  %v651_v17 = vld [vmem:[%s1546_s4 + $0x10] sm:$0xff] }
  0x89   : > { %441 = vmatprep.subr.mxu0 %v303_v18  ;;  %v652_v18 = vld [vmem:[%s1546_s4 + $0x18] sm:$0xff] }
  0x8a   : > { %442 = vmatpush2.msra.mxu0 %v302_v19 }
  0x8b   : > { %444 = vmatmul.mubr.f32.vlgmr.msra.gmra.mxu0 %v258_v20 }
  0x8c   : > { %449 = vmatprep.mubr.f32.mxu0 %v262_v21 }
  0x8f   : > { %450 = vmatmul.mubr.f32.gmra.mxu0 %v261_v22 }
  0x90   : > { %455 = vmatprep.mubr.f32.mxu0 %v265_v23 }
  0x93   : > { %456 = vmatmul.mubr.f32.gmra.mxu0 %v264_v24 }
  0x94   : > { %461 = vmatprep.mubr.f32.mxu0 %v268_v25 }
  0x97   : > { %462 = vmatmul.mubr.f32.gmra.mxu0 %v267_v26 }
  0xd8   : > { %v354_v42 = vpop.permute.xlu1 %353 }
  0xd9   : > { %v364_v30 = vpop.permute.xlu0 %363 }
  0xdc   : > { %v349_v57 = vpop.permute.xlu1 %348 }
  0xdd   : > { %v359_v37 = vpop.permute.xlu0 %358 }
 0x11b   : > { %v534_v27 = vpop.f32.mrf.mxu1 }
 0x11d   : > { %v536_v28 = vpop.f32.mrf.mxu1 }
 0x11f   : > { %v540_v29 = vpop.f32.mrf.mxu1 }
 0x121   : > { %v542_v32 = vpop.f32.mrf.mxu1 }
 0x123   : > { %v546_v35 = vpop.f32.mrf.mxu1 }
 0x125   : > { %v548_v39 = vpop.f32.mrf.mxu1 }
 0x127   : > { %v552_v45 = vpop.f32.mrf.mxu1 }
 0x129   : > { %v554_v53 = vpop.f32.mrf.mxu1 }
 0x14b   : > { %v445_v31 = vpop.f32.mrf.mxu0 }
 0x14c   : > { %v446_v61 = vadd.f32 %v445_v31, %v349_v57 }
 0x14d   : > { %v447_v33 = vpop.f32.mrf.mxu0 }
 0x14e   : > { %v448_v58 = vadd.f32 %v447_v33, %v349_v57  ;;  %v1460_v2 = vadd.f32 %v534_v27, %v446_v61 }
 0x14f   : > { %v451_v34 = vpop.f32.mrf.mxu0 }
 0x150   : > { %v452_v54 = vadd.f32 %v451_v34, %v354_v42  ;;  %v1456_v63 = vadd.f32 %v536_v28, %v448_v58 }
 0x151   : > { %v453_v36 = vpop.f32.mrf.mxu0 }
 0x152   : > { %v454_v50 = vadd.f32 %v453_v36, %v354_v42  ;;  %v1454_v62 = vadd.f32 %v540_v29, %v452_v54  ;;  %v557_v3 = vadd.f32 %v1456_v63, %v1460_v2 }
 0x153   : > { %v457_v38 = vpop.f32.mrf.mxu0 }
 0x154   : > { %v458_v40 = vadd.f32 %v457_v38, %v359_v37  ;;  %v1450_v59 = vadd.f32 %v542_v32, %v454_v50 }
 0x155   : > { %v459_v41 = vpop.f32.mrf.mxu0 }
 0x156   : > { %v460_v43 = vadd.f32 %v459_v41, %v359_v37  ;;  %v1440_v46 = vadd.f32 %v546_v35, %v458_v40  ;;  %v560_v1 = vadd.f32 %v1450_v59, %v1454_v62 }
 0x157   : > { %v463_v44 = vpop.f32.mrf.mxu0 }
 0x158   : > { %v1442_v47 = vadd.f32 %v548_v39, %v460_v43  ;;  %v464_v48 = vadd.f32 %v463_v44, %v364_v30 }
 0x159   : > { %v465_v49 = vpop.f32.mrf.mxu0 }
 0x15a   : > { %v466_v51 = vadd.f32 %v465_v49, %v364_v30  ;;  %v563_v52 = vadd.f32 %v1442_v47, %v1440_v46  ;;  %v1446_v55 = vadd.f32 %v552_v45, %v464_v48 }
 0x15c   : > { %v1448_v56 = vadd.f32 %v554_v53, %v466_v51  ;;  %564 = vadd.xlane.f32.xlu1 %v563_v52 }
 0x15e   : > { %v566_v60 = vadd.f32 %v1448_v56, %v1446_v55 }
 0x160   : > { %567 = vadd.xlane.f32.xlu0 %v566_v60 }
 0x164   : > { %561 = vadd.xlane.f32.xlu0 %v560_v1 }
 0x168   : > { %558 = vadd.xlane.f32.xlu0 %v557_v3 }
 0x1e5   : > { %v565_v4 = vpop.xlane.xlu1 %564 }
 0x1e6   : > { %v572_v7 = vmul.f32 0.00390625, %v565_v4 }
 0x1e9   : > { %v568_v5 = vpop.xlane.xlu0 %567 }
 0x1ea   : > { %v573_v6 = vmul.f32 0.00390625, %v568_v5 }
 0x1ec   : > { %946 = vmatpush3.msra.mxu1 %v573_v6 }
 0x1ed   : > { %947 = vmatprep.subr.mxu1 %v1181_v0  ;;  %v562_v8 = vpop.xlane.xlu0 %561 }
 0x1ee   : > { %v571_v9 = vmul.f32 0.00390625, %v562_v8  ;;  %948 = vmatpush3.msra.mxu1 %v572_v7 }
 0x1ef   : > { %949 = vmatprep.subr.mxu1 %v1181_v0 }
 0x1f0   : > { %950 = vmatpush3.msra.mxu1 %v571_v9 }
 0x1f1   : > { %v559_v10 = vpop.xlane.xlu0 %558  ;;  %951 = vmatprep.subr.mxu1 %v1181_v0  ;;  %v650_v0 = vld [vmem:[%s1546_s4 + $0x8] sm:$0xff] }
 0x1f2   : > { %v570_v11 = vmul.f32 0.00390625, %v559_v10 }
 0x1f4   : > { %952 = vmatpush3.msra.mxu1 %v570_v11 }
 0x1f5   : > { %954 = vmatmul.mubr.msk.f32.vlgmr.msra.gmra.mxu1 %vm366_vm0, %v574_v12 }
 0x1f6   : > { %958 = vmatprep.mubr.msk.f32.mxu1 %vm653_vm2, %v649_v13 }
 0x2b5   : > { %v644_v14 = vpop.f32.mrf.mxu1 }
 0x2b6   : > { %v648_v15 = vmax.f32 %v644_v14, 0.0 }
 0x2b7   : > { %v955_v16 = vpop.f32.mrf.mxu1 }
 0x2b8   : > { %956 = vmatprep.subr.mxu1 %v648_v15 }
 0x2b9   : > { %957 = vmatpush3.msra.mxu1 %v648_v15 }
 0x2ba   : > { %959 = vmatmul.mubr.msk.f32.vlgmr.msra.gmra.mxu1 %vm653_vm2, %v650_v0 }
 0x2bb   : > { %961 = vmatprep.mubr.msk.f32.mxu1 %vm653_vm2, %v651_v17 }
 0x2be   : > { %962 = vmatmul.mubr.msk.f32.gmra.mxu1 %vm653_vm2, %v652_v18 }
 0x37a   : > { %v960_v19 = vpop.f32.mrf.mxu1 }
 0x37b   : > { %v926_v20 = vmul.f32 -1.442695, %v960_v19 }
 0x37c   : > { %v732_v21 = vpop.f32.mrf.mxu1 }
 0x37d   : > { %1035 = vpow2.f32 %v926_v20  ;;  %v925_v22 = vmul.f32 -1.442695, %v732_v21 }
 0x37e   : > { %v963_v23 = vpop.f32.mrf.mxu1 }
 0x37f   : > { %1037 = vpow2.f32 %v925_v22  ;;  %v928_v24 = vmul.f32 -1.442695, %v963_v23 }
 0x380   : > { %v742_v25 = vpop.f32.mrf.mxu1 }
 0x381   : > { %v927_v26 = vmul.f32 -1.442695, %v742_v25  ;;  %1039 = vpow2.f32 %v928_v24 }
 0x383   : > { %1041 = vpow2.f32 %v927_v26 }
 0x38a   : > { %v1036_v27 = vpop.eup %1035 }
 0x38b   : > { %v764_v28 = vadd.f32 1.0, %v1036_v27 }
 0x38c   : > { %v1038_v29 = vpop.eup %1037 }
 0x38d   : > { %1043 = vrcp.f32 %v764_v28  ;;  %v763_v30 = vadd.f32 1.0, %v1038_v29 }
 0x38e   : > { %v1040_v31 = vpop.eup %1039 }
 0x38f   : > { %1045 = vrcp.f32 %v763_v30  ;;  %v766_v34 = vadd.f32 1.0, %v1040_v31 }
 0x390   : > { %v1042_v32 = vpop.eup %1041 }
 0x391   : > { %v765_v33 = vadd.f32 1.0, %v1042_v32 }
 0x393   : > { %1047 = vrcp.f32 %v765_v33 }
 0x394   : > { %1049 = vrcp.f32 %v766_v34 }
 0x39a   : > { %v1044_v35 = vpop.eup %1043 }
 0x39b   : > { %782 = vperm.xlu0 %1033, %v1044_v35  }
 0x39c   : > { %v1046_v36 = vpop.eup %1045 }
 0x39d   : > { %777 = vperm.xlu1 %1034, %v1046_v36  }
 0x3a0   : > { %v1048_v37 = vpop.eup %1047 }
 0x3a1   : > { %787 = vperm.xlu1 %1034, %v1048_v37   ;;  %v1050_v38 = vpop.eup %1049 }
 0x3a5   : > { %792 = vperm.xlu1 %1034, %v1050_v38  }
 0x416   : > { %v783_v39 = vpop.permute.xlu0 %782 }
 0x417   : > { %v797_v40 = vmul.f32 %v783_v39, %v1454_v62  ;;  %v798_v41 = vmul.f32 %v783_v39, %v1450_v59 }
 0x418   : > { %v778_v42 = vpop.permute.xlu1 %777 }
 0x419   : > { %805 = vst [vmem:[%s257_s7 + $0x10] sm:$0xff] %v797_v40  ;;  %806 = vst [vmem:[%s257_s7 + $0x18] sm:$0xff] %v798_v41  ;;  %v795_v43 = vmul.f32 %v778_v42, %v1460_v2  ;;  %v796_v44 = vmul.f32 %v778_v42, %v1456_v63 }
 0x41b   : > { %803 = vst [vmem:[%s257_s7] sm:$0xff] %v795_v43  ;;  %804 = vst [vmem:[%s257_s7 + $0x8] sm:$0xff] %v796_v44 }
 0x41c   : > { %v788_v45 = vpop.permute.xlu1 %787 }
 0x41d   : > { %v799_v48 = vmul.f32 %v788_v45, %v1440_v46  ;;  %v800_v49 = vmul.f32 %v788_v45, %v1442_v47 }
 0x41f   : > { %807 = vst [vmem:[%s257_s7 + $0x20] sm:$0xff] %v799_v48  ;;  %808 = vst [vmem:[%s257_s7 + $0x28] sm:$0xff] %v800_v49 }
 0x420   : > { %v793_v50 = vpop.permute.xlu1 %792 }
 0x421   : > { %v801_v51 = vmul.f32 %v793_v50, %v1446_v55  ;;  %v802_v46 = vmul.f32 %v793_v50, %v1448_v56 }
 0x423   : > { %809 = vst [vmem:[%s257_s7 + $0x30] sm:$0xff] %v801_v51  ;;  %810 = vst [vmem:[%s257_s7 + $0x38] sm:$0xff] %v802_v46 }
 0x424   : > { %1118 = shalt.err (!%p1115_p0)
}
 0x425   : > { %s1119_s23 = scalar_lea.hbm %s1497_s6, 1024  ;;  %s1123_s29 = scalar_lea.hbm %s1547_s5, 2048 }
 0x426   : > { %p1120_p5 = scmp.ne.s32.totalorder %s1497_s6, %s1119_s23  ;;  %p1124_p4 = scmp.lt.s32.totalorder %s1497_s6, %s1547_s5 }
 0x427   : > { %p1125_p6 = scmp.lt.s32.totalorder %s1123_s29, %s1119_s23 }
 0x428   : > { %p1121_p9 = pnand %p1120_p5, %p1563_p11 }
 0x429   : > { %p1126_p8 = por %p1125_p6, %p1124_p4 }
 0x42a   : > { %p1122_p1 = pneg %p1121_p9 }
 0x42c   : > { %p1127_p3 = pnand %p1126_p8, %p1122_p1 }
 0x42e   : > { %1130 = shalt.err (!%p1127_p3)
}
 0x42f   : > { %s1185_s15 = smov 256   ;;  %s1186_s17 = smov 16  }
 0x430   : > { %973 = dma.vmem_to_hbm [thread:$0]  (%p1563_p11), %s1492_s8, 1024, %s1497_s6, %s812_s22, %s1185_s15, %s1185_s15, %s1186_s17  }
 0x431 PF: > { %s840_s27 = sand.u32 1, %s1161_s18   ;;  %p1564_p7 = scmp.ne.s32.totalorder %s1553_s25, 0 }
 0x432   : > { %p1565_p12 = scmp.ge.s32.totalorder %s1173_s21, 2  ;;  %s841_s9 = scalar_lea.sflag [#allocation4], %s840_s27 }
 0x434   : > { %p984_p10 = pnand %p1565_p12, %p1564_p7 }
 0x436   : > { %p985_p2 = pneg %p984_p10 }
 0x438   : > { %1156 = dma.done.wait (%p985_p2), %s841_s9, 1024  }
 0x439   : > { %1158 = vsyncadd (%p985_p2), %s841_s9, 4294966272  ;;  %p19_p13 = scmp.ge.s32.totalorder %s1271_s30, 4   ;;  %s1566_s18 = smov %s1165_s19 }
 0x43a   : > { %s1567_s19 = smov %s1169_s20  ;;  %s1568_s20 = smov %s1288_s13 }
 0x43b   : > { %s1569_s21 = smov %s1271_s30  ;;  %21 = sbr.rel (!%p19_p13) target bundleno = 6 (0x6), region = 89 }
 0x440   :  { %846 = vsyncpa [#allocation3], 1 }
 0x441   :  { %848 = vsyncpa [#allocation3 + $0x1], 1 }
 0x442   :  { %849 = vsyncpa [#allocation6], 1 }
 0x443   :  { %850 = vsyncpa [#allocation4], 1 }
 0x444   :  { %852 = vsyncpa [#allocation4 + $0x1], 1 }

</bundles_post_ra>
